<compile_context>
chip_gen: v6e
topology: v6e:2x2x1
jax: 0.10.0
libtpu: 0.0.40
codegen_flags: <defaults>
</compile_context>

<pallas_src>
import jax
import jax.numpy as jnp
from jax import lax
from jax.experimental import pallas as pl
from jax.experimental.pallas import tpu as pltpu


def _pick_tile(n_pad, max_tile):
    """Largest lane-dense spatial tile <= max_tile dividing n_pad (n_pad % 128 == 0)."""
    if n_pad <= max_tile:
        return n_pad
    for t in (2048, 1024, 512, 384, 256, 128):
        if t <= max_tile and n_pad % t == 0:
            return t
    return 128


def _vmem_limit(nbytes):
    """Tile footprint + 50% headroom, clamped to ~60% of this chip's physical VMEM."""
    try:
        cap = int(pltpu.get_tpu_info().vmem_capacity_bytes)
    except Exception:  # not on TPU / API unavailable -> assume v5e/v6e class
        cap = 128 * 1024 * 1024
    budget = int(cap * 0.6)
    return int(min(max(int(nbytes * 1.5), 8 * 1024 * 1024), budget))


def _pam_stats_kernel(x_ref, wvq_ref, bvq_ref, mt_ref):
    """Accumulate M^T[b] = Q_b @ V_b^T over spatial tiles (reduction on grid axis 2)."""
    C = mt_ref.shape[1]

    @pl.when(pl.program_id(2) == 0)
    def _():
        mt_ref[...] = jnp.zeros_like(mt_ref)

    xb = x_ref[...].astype(jnp.bfloat16)                              # (C, Nt) bf16
    # Fused [Wv; Wq] projection: one bf16 MXU matmul with a well-filled M dim.
    vq = jnp.dot(wvq_ref[...], xb, preferred_element_type=jnp.float32) + bvq_ref[...]
    # Row split at C (sublane-aligned, C % 8 == 0): lowers to vreg selects.
    v_b = vq[:C, :].astype(jnp.bfloat16)                              # (C,  Nt)
    q_b = vq[C:, :].astype(jnp.bfloat16)                              # (Cq, Nt)
    # M^T += q @ v^T : lane-dense (Cq, C) accumulator (last dim = C, unmasked stores).
    mt_ref[...] += lax.dot_general(
        q_b, v_b, dimension_numbers=(((1,), (1,)), ((), ())),
        preferred_element_type=jnp.float32)


def _pam_apply_kernel(x_ref, mt_ref, wk_ref, bk_ref, o_ref):
    """out = M_scaled @ (Wk x + bk) + x for one (batch, spatial tile)."""
    x = x_ref[...]                                                    # (C, Nt)
    xb = x.astype(jnp.bfloat16)
    k = jnp.dot(wk_ref[...], xb, preferred_element_type=jnp.float32) + bk_ref[...]
    # (Cq, C)^T contracted against (Cq, Nt)  ->  (C, Nt), f32 accumulation.
    out = lax.dot_general(
        mt_ref[...], k.astype(jnp.bfloat16),
        dimension_numbers=(((0,), (0,)), ((), ())),
        preferred_element_type=jnp.float32)
    o_ref[...] = (out + x.astype(jnp.float32)).astype(o_ref.dtype)    # f32 residual add


def pam_module_v3(x, wq, bq, wk, bk, wv, bv, gamma, *, max_tile=1024):
    """x: (B, C, H, W) NCHW. 1x1-conv weights given as (Cout, Cin). Returns (B, C, H, W)."""
    B, C, H, W = x.shape
    N = H * W
    Cq = wq.shape[0]
    assert C % 8 == 0, "channel split of the stacked [Wv; Wq] output must be sublane-aligned"
    f32 = jnp.float32
    bf16 = jnp.bfloat16
    out_dtype = x.dtype
    isz = jnp.dtype(x.dtype).itemsize

    # Lane-dense spatial padding; padded (all-zero) columns are corrected below.
    N_pad = -(-N // 128) * 128
    n_extra = N_pad - N
    x_flat = x.reshape(B, C, N)
    if n_extra:
        x_flat = jnp.pad(x_flat, ((0, 0), (0, 0), (0, n_extra)))

    Nt = _pick_tile(N_pad, max_tile)
    num_tiles = N_pad // Nt
    n_split = 2 if (num_tiles >= 2 and num_tiles % 2 == 0) else 1     # feed both v7x TCs at B=1
    tiles_per_split = num_tiles // n_split

    # Weights: bf16 MXU operands (resident, tiny); biases stay f32 (added post-accum).
    wvq_b = jnp.concatenate([wv, wq], axis=0).astype(bf16)            # (C+Cq, C)
    bvq = jnp.concatenate([bv, bq], axis=0).reshape(C + Cq, 1).astype(f32)
    wk_b = wk.astype(bf16)                                            # (Cq, C)
    bk2 = bk.reshape(Cq, 1).astype(f32)

    # ---- pass 1: M^T[b] = Q_b @ V_b^T, reduced over spatial tiles --------------
    vmem1 = (2 * isz * C * Nt                       # x tile, double-buffered
             + (2 + 4 + 2 + 2) * (C + Cq) * Nt      # xb cast + vq f32 + v/q bf16 values
             + 2 * 2 * (C + Cq) * C                 # stacked weights (bf16, dbuf)
             + 2 * 4 * (C + Cq)                     # bias
             + 2 * 4 * Cq * C)                      # resident M^T accumulator
    cost1 = pl.CostEstimate(
        flops=2 * B * N_pad * C * (C + 2 * Cq),
        transcendentals=0,
        bytes_accessed=isz * B * C * N_pad + 2 * (C + Cq) * C
                       + 4 * (C + Cq) + 4 * n_split * B * Cq * C)
    mt_partial = pl.pallas_call(
        _pam_stats_kernel,
        out_shape=jax.ShapeDtypeStruct((n_split, B, Cq, C), f32),
        grid=(n_split, B, tiles_per_split),
        in_specs=[
            pl.BlockSpec((None, C, Nt),
                         lambda s, b, t: (b, 0, s * tiles_per_split + t)),  # x tile
            pl.BlockSpec((C + Cq, C), lambda s, b, t: (0, 0)),              # [Wv; Wq]
            pl.BlockSpec((C + Cq, 1), lambda s, b, t: (0, 0)),              # [bv; bq]
        ],
        out_specs=pl.BlockSpec((None, None, Cq, C), lambda s, b, t: (s, b, 0, 0)),
        compiler_params=pltpu.CompilerParams(
            dimension_semantics=("parallel", "parallel", "arbitrary"),
            vmem_limit_bytes=_vmem_limit(vmem1)),
        cost_estimate=cost1,
    )(x_flat, wvq_b, bvq)

    mt = jnp.sum(mt_partial, axis=0)                                  # (B, Cq, C) f32
    if n_extra:
        # Padded columns contribute bf16(bq) bf16(bv)^T each; subtract them exactly.
        bq_r = bq.astype(bf16).astype(f32)
        bv_r = bv.astype(bf16).astype(f32)
        mt = mt - f32(n_extra) * jnp.outer(bq_r, bv_r)
    scale = jnp.reshape(jnp.asarray(gamma, f32), ()) / f32(N)         # gamma / (H*W)
    mt_b = (mt * scale).astype(bf16)                                  # pre-scaled, bf16

    # ---- pass 2: out = M_scaled @ (Wk x + bk) + x, fully tile-parallel ---------
    vmem2 = (2 * isz * C * Nt + 2 * isz * C * Nt    # x + out tiles, double-buffered
             + (2 + 4 + 4) * C * Nt                 # xb + f32 residual + f32 out values
             + (4 + 2) * Cq * Nt                    # k (f32 + bf16)
             + 4 * 2 * Cq * C + 2 * 4 * Cq)         # M^T + Wk + bk
    cost2 = pl.CostEstimate(
        flops=4 * B * N_pad * C * Cq,
        transcendentals=0,
        bytes_accessed=2 * isz * B * C * N_pad + 2 * B * Cq * C + 2 * Cq * C + 4 * Cq)
    out_flat = pl.pallas_call(
        _pam_apply_kernel,
        out_shape=jax.ShapeDtypeStruct((B, C, N_pad), out_dtype),
        grid=(B, num_tiles),
        in_specs=[
            pl.BlockSpec((None, C, Nt), lambda b, t: (b, 0, t)),      # x tile
            pl.BlockSpec((None, Cq, C), lambda b, t: (b, 0, 0)),      # M^T[b], pre-scaled
            pl.BlockSpec((Cq, C), lambda b, t: (0, 0)),               # Wk
            pl.BlockSpec((Cq, 1), lambda b, t: (0, 0)),               # bk
        ],
        out_specs=pl.BlockSpec((None, C, Nt), lambda b, t: (b, 0, t)),
        compiler_params=pltpu.CompilerParams(
            dimension_semantics=("parallel", "parallel"),
            vmem_limit_bytes=_vmem_limit(vmem2)),
        cost_estimate=cost2,
    )(x_flat, mt_b, wk_b, bk2)

    if n_extra:
        out_flat = out_flat[:, :, :N]
    return out_flat.reshape(B, C, H, W)


def pam_reference(x, wq, bq, wk, bk, wv, bv, gamma):
    """Pure-JAX mirror of the literal torch forward (materializes the N x N energy)."""
    B, C, H, W = x.shape
    N = H * W
    xf = x.reshape(B, C, N).astype(jnp.float32)
    q = jnp.einsum('oc,bcn->bon', wq, xf) + bq[None, :, None]
    k = jnp.einsum('oc,bcn->bon', wk, xf) + bk[None, :, None]
    v = jnp.einsum('oc,bcn->bon', wv, xf) + bv[None, :, None]
    energy = jnp.einsum('bci,bcj->bij', q, k)
    attention = energy / float(N)          # PAM_Module_v3: plain scaling, no softmax
    out = jnp.einsum('bci,bij->bcj', v, attention)
    return (gamma * out + xf).reshape(B, C, H, W).astype(x.dtype)


if __name__ == "__main__":
    C = 32                                 # Cq = C // 8 = 4
    Cq = C // 8

    key = jax.random.PRNGKey(0)
    kx, kwq, kbq, kwk, kbk, kwv, kbv = jax.random.split(key, 7)

    # 1x1 conv weights (torch shape (Cout, Cin, 1, 1)) squeezed to (Cout, Cin).
    wq = jax.random.normal(kwq, (Cq, C), dtype=jnp.float32) * 0.1
    bq = jax.random.normal(kbq, (Cq,), dtype=jnp.float32) * 0.1
    wk = jax.random.normal(kwk, (Cq, C), dtype=jnp.float32) * 0.1
    bk = jax.random.normal(kbk, (Cq,), dtype=jnp.float32) * 0.1
    wv = jax.random.normal(kwv, (C, C), dtype=jnp.float32) * 0.1
    bv = jax.random.normal(kbv, (C,), dtype=jnp.float32) * 0.1

    # Shapes: (16,16) -> N=256 lane-dense (exercises the split tiled reduction at
    # max_tile=128); (10,10) -> N=100 exercises the padding + bias-correction path.
    # gamma=0 matches the torch init (and must reproduce x exactly up to dtype);
    # gamma=0.5 exercises the attention path numerically.
    for (B, H, W) in ((2, 16, 16), (2, 10, 10)):
        x = jax.random.normal(jax.random.fold_in(kx, H), (B, C, H, W), dtype=jnp.float32)
        for max_tile in (128, 1024):
            for gamma in (0.0, 0.5):
                out = pam_module_v3(x, wq, bq, wk, bk, wv, bv, jnp.float32(gamma),
                                    max_tile=max_tile)
                jax.block_until_ready(out)
                ref = pam_reference(x, wq, bq, wk, bk, wv, bv, gamma)
                assert out.shape == (B, C, H, W)
                err = float(jnp.max(jnp.abs(out - ref)))
                # bf16 MXU operands with f32 accumulation: loosened tolerance.
                assert jnp.allclose(out, ref, atol=5e-3, rtol=5e-3), \
                    (H, W, max_tile, gamma, err)

    print("KERNEL_OK")
</pallas_src>

<mosaic_0001>
module attributes {stable_mosaic.version = 11 : i64} {
  func.func @_pam_stats_kernel(%arg0: i32, %arg1: i32, %arg2: i32, %arg3: memref<1x32x128xf32, #tpu.memory_space<vmem>>, %arg4: memref<36x32xbf16, #tpu.memory_space<vmem>>, %arg5: memref<36x1xf32, #tpu.memory_space<vmem>>, %arg6: memref<1x1x4x32xf32, #tpu.memory_space<vmem>>) attributes {dimension_semantics = [#tpu.dimension_semantics<parallel>, #tpu.dimension_semantics<parallel>, #tpu.dimension_semantics<arbitrary>], iteration_bounds = array<i64: 2, 2, 1>, scalar_prefetch = 0 : i64, scratch_operands = 0 : i64, tpu.core_type = #tpu.core_type<tc>, window_params = [{transform_indices = @transform_0, window_bounds = array<i64: 1, 32, 128>}, {pipeline_mode = #tpu.pipeline_mode<synchronous>, transform_indices = @transform_1, window_bounds = array<i64: 36, 32>}, {pipeline_mode = #tpu.pipeline_mode<synchronous>, transform_indices = @transform_2, window_bounds = array<i64: 36, 1>}, {transform_indices = @transform_3, window_bounds = array<i64: 1, 1, 4, 32>}]} {
    %c0_i32 = arith.constant 0 : i32
    %0 = arith.cmpi eq, %arg2, %c0_i32 : i32
    %1 = arith.extui %0 : i1 to i32
    %c0_i32_0 = arith.constant 0 : i32
    %2 = arith.cmpi ne, %1, %c0_i32_0 : i32
    scf.if %2 {
      %cst_16 = arith.constant 0.000000e+00 : f32
      %22 = vector.broadcast %cst_16 : f32 to vector<4x32xf32>
      %c0_17 = arith.constant 0 : index
      %c0_18 = arith.constant 0 : index
      %c0_19 = arith.constant 0 : index
      %c0_20 = arith.constant 0 : index
      %23 = vector.load %arg6[%c0_17, %c0_18, %c0_19, %c0_20] : memref<1x1x4x32xf32, #tpu.memory_space<vmem>>, vector<1x1x4x32xf32>
      %24 = vector.shape_cast %23 : vector<1x1x4x32xf32> to vector<4x32xf32>
      %25 = vector.shape_cast %22 : vector<4x32xf32> to vector<1x1x4x32xf32>
      tpu.vector_store %arg6[%c0_17, %c0_18, %c0_19, %c0_20], %25 {strides = array<i32>} : memref<1x1x4x32xf32, #tpu.memory_space<vmem>>, vector<1x1x4x32xf32>,
    } else {
    }
    %c0 = arith.constant 0 : index
    %c0_1 = arith.constant 0 : index
    %c0_2 = arith.constant 0 : index
    %3 = vector.load %arg3[%c0, %c0_1, %c0_2] : memref<1x32x128xf32, #tpu.memory_space<vmem>>, vector<1x32x128xf32>
    %4 = vector.shape_cast %3 : vector<1x32x128xf32> to vector<32x128xf32>
    %5 = arith.truncf %4 : vector<32x128xf32> to vector<32x128xbf16>
    %c0_3 = arith.constant 0 : index
    %c0_4 = arith.constant 0 : index
    %6 = vector.load %arg4[%c0_3, %c0_4] : memref<36x32xbf16, #tpu.memory_space<vmem>>, vector<36x32xbf16>
    %cst = arith.constant dense<0.000000e+00> : vector<36x128xf32>
    %7 = tpu.matmul %6, %5, %cst {dimension_numbers = #tpu.dot_dimension_numbers<[1], [0], [0], [1], [0, 0, 1, 1], [], []>} : vector<36x32xbf16>, vector<32x128xbf16>, vector<36x128xf32> -> vector<36x128xf32>
    %c0_5 = arith.constant 0 : index
    %c0_6 = arith.constant 0 : index
    %8 = vector.load %arg5[%c0_5, %c0_6] : memref<36x1xf32, #tpu.memory_space<vmem>>, vector<36x1xf32>
    %9 = vector.broadcast %8 : vector<36x1xf32> to vector<36x128xf32>
    %10 = arith.addf %7, %9 : vector<36x128xf32>
    %11 = vector.extract_strided_slice %10 {offsets = [0, 0], sizes = [32, 128], strides = [1, 1]} : vector<36x128xf32> to vector<32x128xf32>
    %12 = arith.truncf %11 : vector<32x128xf32> to vector<32x128xbf16>
    %13 = vector.extract_strided_slice %10 {offsets = [32, 0], sizes = [4, 128], strides = [1, 1]} : vector<36x128xf32> to vector<4x128xf32>
    %14 = arith.truncf %13 : vector<4x128xf32> to vector<4x128xbf16>
    %c0_7 = arith.constant 0 : index
    %c0_8 = arith.constant 0 : index
    %c0_9 = arith.constant 0 : index
    %c0_10 = arith.constant 0 : index
    %15 = vector.load %arg6[%c0_7, %c0_8, %c0_9, %c0_10] : memref<1x1x4x32xf32, #tpu.memory_space<vmem>>, vector<1x1x4x32xf32>
    %16 = vector.shape_cast %15 : vector<1x1x4x32xf32> to vector<4x32xf32>
    %cst_11 = arith.constant dense<0.000000e+00> : vector<4x32xf32>
    %17 = tpu.matmul %14, %12, %cst_11 {dimension_numbers = #tpu.dot_dimension_numbers<[1], [1], [0], [0], [0, 0, 1, 0], [], []>} : vector<4x128xbf16>, vector<32x128xbf16>, vector<4x32xf32> -> vector<4x32xf32>
    %18 = arith.addf %16, %17 : vector<4x32xf32>
    %c0_12 = arith.constant 0 : index
    %c0_13 = arith.constant 0 : index
    %c0_14 = arith.constant 0 : index
    %c0_15 = arith.constant 0 : index
    %19 = vector.load %arg6[%c0_12, %c0_13, %c0_14, %c0_15] : memref<1x1x4x32xf32, #tpu.memory_space<vmem>>, vector<1x1x4x32xf32>
    %20 = vector.shape_cast %19 : vector<1x1x4x32xf32> to vector<4x32xf32>
    %21 = vector.shape_cast %18 : vector<4x32xf32> to vector<1x1x4x32xf32>
    tpu.vector_store %arg6[%c0_12, %c0_13, %c0_14, %c0_15], %21 {strides = array<i32>} : memref<1x1x4x32xf32, #tpu.memory_space<vmem>>, vector<1x1x4x32xf32>,
    return
  }
  func.func @transform_0(%arg0: i32, %arg1: i32, %arg2: i32) -> (i32, i32, i32) {
    %c1_i32 = arith.constant 1 : i32
    %0 = arith.muli %arg0, %c1_i32 : i32
    %1 = arith.addi %0, %arg2 : i32
    %c0_i32 = arith.constant 0 : i32
    %c0_i32_0 = arith.constant 0 : i32
    return %arg1, %c0_i32, %1 : i32, i32, i32
  }
  func.func @transform_1(%arg0: i32, %arg1: i32, %arg2: i32) -> (i32, i32) {
    %c0_i32 = arith.constant 0 : i32
    %c0_i32_0 = arith.constant 0 : i32
    %c0_i32_1 = arith.constant 0 : i32
    return %c0_i32, %c0_i32_0 : i32, i32
  }
  func.func @transform_2(%arg0: i32, %arg1: i32, %arg2: i32) -> (i32, i32) {
    %c0_i32 = arith.constant 0 : i32
    %c0_i32_0 = arith.constant 0 : i32
    %c0_i32_1 = arith.constant 0 : i32
    return %c0_i32, %c0_i32_0 : i32, i32
  }
  func.func @transform_3(%arg0: i32, %arg1: i32, %arg2: i32) -> (i32, i32, i32, i32) {
    %c0_i32 = arith.constant 0 : i32
    %c0_i32_0 = arith.constant 0 : i32
    %c0_i32_1 = arith.constant 0 : i32
    return %arg0, %arg1, %c0_i32, %c0_i32_0 : i32, i32, i32, i32
  }
}

</mosaic_0001>

<bundles_post_ra>
// kernel: tpu_custom_call.1
= control target key start
LH: loop header
LB: loop body
LE: loop exit
PB: predicated region body
PF: predicated region fallthrough
CT: control target
= control target key end

     0   :  { %8 = vsyncpa [#allocation3], 0  ;;  %s993_s0 = inlined_call_operand.hbm [shape: f32[2,32,256], index: 0, kind: input, shape index: {}]   ;;  %s994_s1 = inlined_call_operand.vmem [shape: bf16[36,32], index: 1, kind: input, shape index: {}]   ;;  %s995_s2 = inlined_call_operand.vmem [shape: f32[36,1], index: 2, kind: input, shape index: {}]   ;;  %s996_s3 = inlined_call_operand.hbm [shape: f32[2,2,4,32], index: 3, kind: output, shape index: {}]  }
   0x1   :  { %10 = vsyncpa [#allocation3 + $0x1], 0 }
   0x2   :  { %11 = vsyncpa [#allocation4], 0 }
   0x3   :  { %13 = vsyncpa [#allocation4 + $0x1], 0  ;;  %s792_s12 = smov 0   ;;  %s794_s13 = smov 0  }
   0x4   :  { %s796_s14 = smov 0   ;;  %s798_s15 = smov 0  }
   0x5   :  { %s800_s16 = smov 0   ;;  %s802_s17 = smov 0  }
   0x6   :  { %s804_s18 = smov 0   ;;  %s806_s19 = smov 0  }
   0x7 LB: > { %s496_s20 = sadd.s32 4294967295, %s762_s19   ;;  %s497_s21 = sadd.s32 4294967294, %s762_s19   ;;  %s762_s19 = sphi %s806_s19, %s19_s19   ;;  %s758_s18 = sphi %s804_s18, %s1014_s18   ;;  %s754_s17 = sphi %s802_s17, %s1013_s17   ;;  %s750_s16 = sphi %s800_s16, %s1012_s16   ;;  %s746_s15 = sphi %s798_s15, %s1011_s15   ;;  %s742_s14 = sphi %s796_s14, %s1010_s14   ;;  %s738_s13 = sphi %s794_s13, %s1009_s13   ;;  %s734_s12 = sphi %s792_s12, %s1008_s12  }
   0x8   : > { %s34_s22 = sadd.s32 1, %s754_s17  ;;  %s38_s23 = sadd.s32 1, %s758_s18 }
   0x9   : > { %p36_p0 = scmp.ge.s32.totalorder %s34_s22, 2  ;;  %s49_s24 = sadd.s32 1, %s742_s14 }
   0xa   : > { %p56_p1 = scmp.ne.s32.totalorder %s742_s14, %s738_s13  ;;  %p57_p2 = scmp.eq.s32.totalorder %s762_s19, 0 }
   0xb   : > { %s1016_s22 = smov (%p36_p0, %s34_s22), 0  ;;  %s1018_s23 = smov (!%p36_p0, %s38_s23), %s758_s18 }
   0xc   : > { %999 = sst [smem:[#allocation8_spill]] %s1016_s22  ;;  %s44_s25 = ssub.s32 %s754_s17, %s1016_s22 }
   0xd   : > { %p845_p3 = por %p57_p2, %p56_p1  ;;  %p40_p4 = scmp.ge.s32.totalorder %s1018_s23, 2 }
   0xe   : > { %p62_p5 = scmp.ne.s32.totalorder %s738_s13, %s734_s12  ;;  %p63_p6 = scmp.eq.s32.totalorder %s496_s20, 0 }
   0xf   : > { %p130_p7 = scmp.eq.s32.totalorder %s496_s20, 3  ;;  %s1020_s23 = smov (%p40_p4, %s1018_s23), 0 }
  0x10   : > { %1001 = sst [smem:[#allocation9_spill]] %s1020_s23  ;;  %p853_p8 = por %p63_p6, %p62_p5 }
  0x11   : > { %p857_p9 = por %p130_p7, %p56_p1  ;;  %s45_s29 = ssub.s32 %s758_s18, %s1020_s23 }
  0x12   : > { %p136_p10 = scmp.eq.s32.totalorder %s497_s21, 3  ;;  %s46_s30 = sor.u32 %s45_s29, %s44_s25 }
  0x13   : > { %p47_p11 = scmp.eq.s32.totalorder %s46_s30, 0  ;;  %p561_p13 = scmp.lt.s32.totalorder %s762_s19, 4 }
  0x14   : > { %p863_p12 = por %p136_p10, %p62_p5  ;;  %s162_s5 = sand.u32 1, %s742_s14  }
  0x15   : > { %s870_s6 = scalar_select %p47_p11, %s742_s14, %s49_s24  }
  0x16   : > { %s500_s7 = sshll.u32 %s162_s5, 5  ;;  %s501_s8 = sshll.u32 %s754_s17, 3 }
  0x17   : > { %s172_s9 = sadd.s32 %s758_s18, %s501_s8  ;;  %s166_s10 = scalar_lea.vmem [#allocation2], %s500_s7 }
  0x18   : > { %s175_s11 = sshll.u32 %s166_s10, 4  ;;  %s502_s20 = sshll.u32 %s172_s9, 7  ;;  %s176_s11 = int_to_ptr.vmem [resolvable:$true] %s175_s11 }
  0x19   : > { %s174_s21 = scalar_lea.hbm %s993_s0, %s502_s20  ;;  %p879_p0 = pnand %p561_p13, %p845_p3 }
  0x1a   : > { %s163_s29 = scalar_lea.sflag [#allocation3], %s162_s5  ;;  %s651_s24 = scalar_lea.vmem %s176_s11, 512 }
  0x1b   : > { %p640_p1 = pneg %p879_p0  ;;  %p652_p2 = scmp.ne.s32.totalorder %s176_s11, %s651_s24 }
  0x1c   : > { %s764_s30 = smov [#allocation2]  }
  0x1d   : > { %p654_p4 = pnand %p652_p2, %p640_p1  ;;  %s656_s7 = sshll.u32 %s764_s30, 4  ;;  %s657_s7 = int_to_ptr.vmem [resolvable:$false] %s656_s7 }
  0x1e   : > { %s658_s8 = scalar_lea.vmem %s657_s7, 1024  ;;  %p659_p6 = scmp.lt.s32.totalorder %s176_s11, %s657_s7 }
  0x1f   : > { %p655_p5 = pneg %p654_p4  ;;  %p660_p7 = scmp.lt.s32.totalorder %s658_s8, %s651_s24 }
  0x21   : > { %p661_p10 = por %p660_p7, %p659_p6 }
  0x23   : > { %p662_p11 = pnand %p661_p10, %p655_p5 }
  0x25   : > { %665 = shalt.err (!%p662_p11)
}
  0x26   : > { %s765_s22 = smov 256   ;;  %s766_s23 = smov 128  }
  0x27   : > { %s767_s26 = smov 8   ;;  %p503_p3 = scmp.ge.s32.totalorder %s762_s19, 1 }
  0x28   : > { %556 = dma.hbm_to_vmem [thread:$0]  (!%p879_p0), %s174_s21, 512, %s176_s11, %s163_s29, %s765_s22, %s766_s23, %s767_s26  }
  0x29   : > { %p183_p13 = scmp.lt.s32.totalorder %s762_s19, 5 }
  0x2b   : > { %p184_p1 = pnand %p503_p3, %p183_p13 }
  0x2c   : > { %s890_s5 = sand.u32 (!%p184_p1), 1, %s738_s13  }
  0x2d   : > { %187 = sbr.rel (%p184_p1) target bundleno = 495 (0x1ef), region = 32  ;;  %s504_s9 = sshll.u32 (!%p184_p1), %s890_s5, 5 }
  0x2e   : > { %s190_s10 = scalar_lea.sflag (!%p184_p1), [#allocation3], %s890_s5  ;;  %s193_s20 = scalar_lea.vmem (!%p184_p1), [#allocation2], %s504_s9 }
  0x32   : > { %725 = dma.done.wait (%p853_p8), %s190_s10, 512  }
  0x33   : > { %727 = vsyncadd (%p853_p8), %s190_s10, 4294966784  ;;  %v768_v0 = vmov 0.0   ;;  %vm769_vm0 = vmmov 0   ;;  %v770_v1 = vmov 0   ;;  %v226_v2 = vld [vmem:[%s193_s20 + $0x10] sm:$0xff]  ;;  %v227_v3 = vld [vmem:[%s193_s20 + $0x18] sm:$0xff] }
  0x34   : > { %525 = vmatprep.subr.bf16.mxu0 %v768_v0  ;;  %529 = vmatprep.mubr.msk.bf16.mxu0 %vm769_vm0, %v768_v0  ;;  %v224_v4 = vld [vmem:[%s193_s20] sm:$0xff]  ;;  %v229_v5 = vpack.c.bf16 %v227_v3, %v226_v2  ;;  %v225_v6 = vld [vmem:[%s193_s20 + $0x8] sm:$0xff]  ;;  %v237_v8 = vld [vmem:[%s995_s2 + $0x10] sm:$0xff]  ;;  %vm278_vm1 = vcmask 261120   ;;  %s505_s11 = sshll.u32 %s890_s5, 2  ;;  %vm222_vm2 = vcmask 257024  }
  0x35   : > { %634 = vset.pattern.permute.xlu1 %v770_v1  ;;  %633 = vset.pattern.permute.xlu0 %v770_v1  ;;  %v228_v7 = vpack.c.bf16 %v225_v6, %v224_v4  ;;  %v235_v9 = vld [vmem:[%s995_s2] sm:$0xff]  ;;  %v238_v11 = vld [vmem:[%s995_s2 + $0x18] sm:$0xff]  ;;  %v236_v12 = vld [vmem:[%s995_s2 + $0x8] sm:$0xff]  ;;  %s927_s21 = scalar_lea.vmem [#allocation5], %s505_s11  ;;  %s513_s25 = sshll.u32 %s750_s16, 1 }
  0x36   : > { %541 = vmatprep.subr.bf16.mxu1 %v768_v0  ;;  %545 = vmatprep.mubr.msk.bf16.mxu1 %vm769_vm0, %v768_v0  ;;  %v635_v10 = vld [vmem:[%s994_s1] sm:$0xff]   ;;  %v636_v14 = vld [vmem:[%s994_s1 + $0x8] sm:$0xff]   ;;  %v637_v15 = vld [vmem:[%s994_s1 + $0x10] ss:$0 sps:$4 sm:$0x33]   ;;  %s403_s29 = sadd.s32 %s746_s15, %s513_s25  ;;  %s407_s30 = sshll.u32 %s927_s21, 4  ;;  %s940_s30 = int_to_ptr.vmem [resolvable:$true] %s407_s30 }
  0x37   : > { %526 = vmatpush3.bf16.msra.mxu0 %v229_v5  ;;  %252 = vperm.xlu0 %633, %v237_v8   ;;  %v239_v13 = vld [vmem:[%s995_s2 + $0x20] sm:$0xf]  ;;  %223 = vst.msk [vmem:[%s927_s21] sm:$0xf] %vm222_vm2, %v768_v0  ;;  %s514_s24 = sshll.u32 %s403_s29, 6  ;;  %s392_s15 = scalar_lea.sflag [#allocation4], %s890_s5 }
  0x38   : > { %527 = vmatprep.subr.bf16.mxu0 %v768_v0  ;;  %242 = vperm.xlu1 %634, %v235_v9   ;;  %s938_s22 = scalar_lea.hbm %s996_s3, %s514_s24  ;;  %s666_s16 = scalar_lea.vmem %s940_s30, 64 }
  0x39   : > { %p667_p8 = scmp.ne.s32.totalorder %s940_s30, %s666_s16  ;;  %s771_s23 = smov [#allocation5]  }
  0x3a   : > { %s670_s26 = sshll.u32 %s771_s23, 4  ;;  %s671_s26 = int_to_ptr.vmem [resolvable:$false] %s670_s26 }
  0x3b   : > { %528 = vmatpush3.bf16.msra.mxu0 %v228_v7  ;;  %257 = vperm.xlu0 %633, %v238_v11   ;;  %p668_p0 = pnand %p667_p8, %p857_p9  ;;  %s672_s9 = scalar_lea.vmem %s671_s26, 128 }
  0x3c   : > { %247 = vperm.xlu1 %634, %v236_v12   ;;  %p673_p4 = scmp.lt.s32.totalorder %s940_s30, %s671_s26  ;;  %p674_p5 = scmp.lt.s32.totalorder %s672_s9, %s666_s16 }
  0x3d   : > { %p669_p2 = pneg %p668_p0 }
  0x3e   : > { %530 = vmatmul.mubr.msk.bf16.vlgmr.msra.gmra.mxu0 %vm278_vm1, %v635_v10  ;;  %v347_v41 = vld [vmem:[%s927_s21] sm:$0xf]  ;;  %p675_p6 = por %p674_p5, %p673_p4 }
  0x3f   : > { %533 = vmatprep.mubr.msk.bf16.mxu0 %vm769_vm0, %v768_v0  ;;  %262 = vperm.xlu0 %633, %v239_v13  }
  0x40   : > { %p676_p7 = pnand %p675_p6, %p669_p2 }
  0x46   : > { %534 = vmatmul.mubr.msk.bf16.gmra.mxu0 %vm278_vm1, %v636_v14 }
  0x47   : > { %537 = vmatprep.mubr.msk.bf16.mxu0 %vm769_vm0, %v768_v0 }
  0x4e   : > { %538 = vmatmul.mubr.msk.bf16.gmra.mxu0 %vm278_vm1, %v637_v15 }
  0xb2   : > { %v253_v19 = vpop.permute.xlu0 %252 }
  0xb3   : > { %v243_v22 = vpop.permute.xlu1 %242 }
  0xb6   : > { %v258_v24 = vpop.permute.xlu0 %257 }
  0xb7   : > { %v248_v30 = vpop.permute.xlu1 %247 }
  0xba   : > { %v263_v38 = vpop.permute.xlu0 %262 }
  0xfe   : > { %v322_v16 = vpop.f32.mrf.mxu0 }
  0xff   : > { %v323_v35 = vadd.f32 %v322_v16, %v243_v22 }
 0x100   : > { %v531_v17 = vpop.f32.mrf.mxu0 }
 0x102   : > { %v325_v18 = vpop.f32.mrf.mxu0 }
 0x103   : > { %v326_v33 = vadd.f32 %v325_v18, %v248_v30 }
 0x104   : > { %v532_v20 = vpop.f32.mrf.mxu0 }
 0x105   : > { %v344_v37 = vpack.c.bf16 %v326_v33, %v323_v35 }
 0x106   : > { %v330_v21 = vpop.f32.mrf.mxu0 }
 0x107   : > { %v331_v26 = vadd.f32 %v330_v21, %v253_v19 }
 0x108   : > { %v535_v23 = vpop.f32.mrf.mxu0 }
 0x10a   : > { %v333_v25 = vpop.f32.mrf.mxu0 }
 0x10b   : > { %v334_v27 = vadd.f32 %v333_v25, %v258_v24 }
 0x10c   : > { %v536_v28 = vpop.f32.mrf.mxu0 }
 0x10d   : > { %v345_v29 = vpack.c.bf16 %v334_v27, %v331_v26 }
 0x10e   : > { %v338_v31 = vpop.f32.mrf.mxu0 }
 0x10f   : > { %542 = vmatpush3.bf16.xpose.msra.mxu1 %v345_v29  ;;  %v339_v39 = vadd.f32 %v338_v31, %v263_v38 }
 0x110   : > { %v539_v32 = vpop.f32.mrf.mxu0  ;;  %543 = vmatprep.subr.bf16.mxu1 %v768_v0 }
 0x111   : > { %v346_v40 = vpack.c.bf16 %v339_v39, %v339_v39 }
 0x112   : > { %v341_v34 = vpop.f32.mrf.mxu0 }
 0x114   : > { %v540_v36 = vpop.f32.mrf.mxu0 }
 0x117   : > { %544 = vmatpush3.bf16.xpose.msra.mxu1 %v344_v37 }
 0x11e   : > { %546 = vmatmul.mubr.bf16.vlgmr.msra.gmra.mxu1 %v346_v40 }
 0x1de   : > { %v382_v42 = vpop.f32.mrf.mxu1 }
 0x1df   : > { %v388_v43 = vadd.f32 %v382_v42, %v347_v41 }
 0x1e0   : > { %v547_v44 = vpop.f32.mrf.mxu1 }
 0x1e1   : > { %390 = vst.msk [vmem:[%s927_s21] sm:$0xf] %vm222_vm2, %v388_v43 }
 0x1e2   : > { %v385_v45 = vpop.f32.mrf.mxu1 }
 0x1e3   : > { %679 = shalt.err (!%p676_p7)
}
 0x1e4   : > { %s680_s10 = scalar_lea.hbm %s938_s22, 64  ;;  %s684_s27 = scalar_lea.hbm %s996_s3, 256 }
 0x1e5   : > { %p681_p10 = scmp.ne.s32.totalorder %s938_s22, %s680_s10  ;;  %p685_p13 = scmp.lt.s32.totalorder %s938_s22, %s996_s3 }
 0x1e6   : > { %p686_p1 = scmp.lt.s32.totalorder %s684_s27, %s680_s10 }
 0x1e7   : > { %p682_p11 = pnand %p681_p10, %p857_p9 }
 0x1e8   : > { %p687_p8 = por %p686_p1, %p685_p13 }
 0x1e9   : > { %p683_p3 = pneg %p682_p11 }
 0x1eb   : > { %p688_p0 = pnand %p687_p8, %p683_p3 }
 0x1ed   : > { %691 = shalt.err (!%p688_p0)
}
 0x1ee   : > { %551 = dma.vmem_to_hbm [thread:$0]  (%p857_p9), %s940_s30, 64, %s938_s22, %s392_s15   ;;  %v548_v46 = vpop.f32.mrf.mxu1 }
 0x1ef PF: > { %p562_p2 = scmp.ge.s32.totalorder %s762_s19, 2  ;;  %s419_s25 = sand.u32 1, %s734_s12  }
 0x1f0   : > { %s420_s29 = scalar_lea.sflag [#allocation4], %s419_s25 }
 0x1f1   : > { %p558_p4 = pnand %p562_p2, %p863_p12 }
 0x1f3   : > { %p559_p5 = pneg %p558_p4 }
 0x1f5   : > { %729 = dma.done.wait (%p559_p5), %s420_s29, 64  }
 0x1f6   : > { %731 = vsyncadd (%p559_p5), %s420_s29, 4294967232  ;;  %s19_s19 = sadd.s32 1, %s762_s19   ;;  %s1006_s28 = sld [smem:[#allocation8_spill]] }
 0x1f7   : > { %p16_p6 = scmp.ge.s32.totalorder %s19_s19, 6   ;;  %s1007_s24 = sld [smem:[#allocation9_spill]] }
 0x1f8   : > { %s1008_s12 = smov %s738_s13  ;;  %s1009_s13 = smov %s742_s14 }
 0x1f9   : > { %s1010_s14 = smov %s870_s6  ;;  %s1011_s15 = smov %s754_s17 }
 0x1fa   : > { %s1012_s16 = smov %s758_s18  ;;  %18 = sbr.rel (!%p16_p6) target bundleno = 7 (0x7), region = 81 }
 0x1fc   : > { %s1013_s17 = smov %s1006_s28 }
 0x1fd   : > { %s1014_s18 = smov %s1007_s24 }
 0x1ff   :  { %425 = vsyncpa [#allocation3], 1 }
 0x200   :  { %427 = vsyncpa [#allocation3 + $0x1], 1 }
 0x201   :  { %428 = vsyncpa [#allocation4], 1 }
 0x202   :  { %430 = vsyncpa [#allocation4 + $0x1], 1 }

</bundles_post_ra>
